<compile_context>
chip_gen: v5e
topology: v5e:2x2
jax: 0.10.0
libtpu: 0.0.40
codegen_flags: <defaults>
</compile_context>

<pallas_src>
import functools

import jax
import jax.numpy as jnp
from jax.experimental import pallas as pl
from jax.experimental.pallas import tpu as pltpu


def _round_up(x, m):
    return (x + m - 1) // m * m


def _vmem_limit(bytes_needed):
    # Generous headroom, capped at the smallest per-generation physical VMEM (v7x: 64 MiB).
    return int(min(max(2 * bytes_needed, 16 << 20), 64 << 20))


# ----------------------- fused single-VMEM-block kernel (small/moderate N) -----------------------
def _fused_two_layer_kernel(a_sp_ref, a_si_ref, x_ref, w1_ref, b1_ref, w2_ref, b2_ref, o_ref):
    """Fused 2-layer HeteroRGCN forward for node type 'cell' (everything VMEM-resident).

    a_sp/a_si : (N, N)   bf16  0.5 * D^-1/2 (A + I) D^-1/2 per relation (0.5 = relation mean)
    x         : (N, Fi)  bf16  zero-padded input features        (Fi multiple of 128)
    w1        : (Fi, 2H) bf16  [W1_spatial | W1_similar], padded (H  multiple of 128)
    b1        : (1, H)   f32   0.5*(b1_spatial + b1_similar), padded
    w2        : (H, 2O)  bf16  [W2_spatial | W2_similar], padded (O  multiple of 128)
    b2        : (1, O)   f32
    o         : (N, O)   f32
    """
    hdim = b1_ref.shape[-1]
    odim = b2_ref.shape[-1]

    a_sp = a_sp_ref[...]
    a_si = a_si_ref[...]

    # ---- layer 1: HeteroConv(GCNConv x2, mean) + relu ------------------------------------
    xw = jnp.dot(x_ref[...], w1_ref[...], preferred_element_type=jnp.float32)      # (N, 2H)
    h = (jnp.dot(a_sp, xw[:, :hdim].astype(jnp.bfloat16), preferred_element_type=jnp.float32)
         + jnp.dot(a_si, xw[:, hdim:].astype(jnp.bfloat16), preferred_element_type=jnp.float32)
         + b1_ref[...])
    h = jnp.maximum(h, 0.0).astype(jnp.bfloat16)                                    # (N, H)

    # ---- layer 2: HeteroConv(GCNConv x2, mean) --------------------------------------------
    hw = jnp.dot(h, w2_ref[...], preferred_element_type=jnp.float32)               # (N, 2O)
    out = (jnp.dot(a_sp, hw[:, :odim].astype(jnp.bfloat16), preferred_element_type=jnp.float32)
           + jnp.dot(a_si, hw[:, odim:].astype(jnp.bfloat16), preferred_element_type=jnp.float32)
           + b2_ref[...])
    o_ref[...] = out.astype(o_ref.dtype)


def _fused_forward(a_sp, a_si, x_p, w1, b1, w2, b2, footprint_bytes):
    n = x_p.shape[0]
    out_p = b2.shape[-1]
    vmem = pl.BlockSpec(memory_space=pltpu.MemorySpace.VMEM)
    return pl.pallas_call(
        _fused_two_layer_kernel,
        out_shape=jax.ShapeDtypeStruct((n, out_p), jnp.float32),
        in_specs=[vmem] * 7,
        out_specs=vmem,
        compiler_params=pltpu.CompilerParams(vmem_limit_bytes=_vmem_limit(footprint_bytes)),
    )(a_sp, a_si, x_p, w1, b1, w2, b2)


# ----------------------- row-tiled per-layer kernel (large N / v7x 2-TC path) --------------------
def _layer_agg_kernel(a_sp_ref, a_si_ref, xw_ref, b_ref, o_ref, *, relu):
    """One hetero layer's aggregation for a (tm, N) destination-row tile.

    a_sp/a_si : (tm, N)  bf16  pre-scaled adjacency row tiles
    xw        : (N, 2H)  bf16  precomputed [X @ W_sp | X @ W_si]  (grid-resident)
    b         : (1, H)   f32
    o         : (tm, H)  f32
    """
    hdim = b_ref.shape[-1]
    acc = (jnp.dot(a_sp_ref[...], xw_ref[:, :hdim], preferred_element_type=jnp.float32)
           + jnp.dot(a_si_ref[...], xw_ref[:, hdim:], preferred_element_type=jnp.float32)
           + b_ref[...])
    if relu:
        acc = jnp.maximum(acc, 0.0)
    o_ref[...] = acc.astype(o_ref.dtype)


def _pick_block_rows(n_rows, n_src, width, budget_bytes):
    """Largest multiple-of-8 destination-row tile whose per-step footprint fits the budget.

    Per step: double-buffered bf16 adjacency tiles (both relations), a double-buffered f32
    output tile, plus the grid-resident (n_src, 2*width) bf16 xw.  On v7x use roughly half
    the budget you would use on v5e/v6e (64 vs 128 MiB physical VMEM).
    """
    resident = n_src * 2 * width * 2 + width * 4 * 2 + (1 << 20)
    per_row = 2 * (2 * n_src * 2 + width * 4)
    tm = (budget_bytes - resident) // per_row
    tm = max(8, min(n_rows, (int(tm) // 8) * 8))
    return int(tm)


def _tiled_layer(a_sp, a_si, xw, b, *, relu, block_rows):
    n_rows, n_src = a_sp.shape
    width = b.shape[-1]
    grid = (n_rows // block_rows,)
    step_bytes = (2 * (2 * block_rows * n_src * 2 + block_rows * width * 4)
                  + n_src * 2 * width * 2 + width * 4 * 2)
    return pl.pallas_call(
        functools.partial(_layer_agg_kernel, relu=relu),
        out_shape=jax.ShapeDtypeStruct((n_rows, width), jnp.float32),
        grid=grid,
        in_specs=[
            pl.BlockSpec((block_rows, n_src), lambda i: (i, 0)),
            pl.BlockSpec((block_rows, n_src), lambda i: (i, 0)),
            pl.BlockSpec((n_src, 2 * width), lambda i: (0, 0)),
            pl.BlockSpec((1, width), lambda i: (0, 0)),
        ],
        out_specs=pl.BlockSpec((block_rows, width), lambda i: (i, 0)),
        compiler_params=pltpu.CompilerParams(
            dimension_semantics=("parallel",),            # shard row tiles across TCs (v7x)
            vmem_limit_bytes=_vmem_limit(step_bytes),
        ),
    )(a_sp, a_si, xw, b)


# ----------------------------------------- wrapper -----------------------------------------------
def hetero_rgcn_forward(x, a_spatial, a_similar, params, *, block_rows=None,
                        single_block_budget_bytes=40 << 20):
    """HeteroRGCN forward on node type 'cell'.

    x                   : (N, in_ch) f32 node features.
    a_spatial/a_similar : (N, N) bf16 dense normalized adjacencies per relation, ALREADY
                          pre-scaled by the 0.5 relation-mean — build them with
                          gcn_norm_dense(edge_index, N, scale=0.5, dtype=jnp.bfloat16).
    block_rows          : force the row-tiled per-layer path with this tile height
                          (multiple of 8).  None -> fused single-VMEM-block path if it fits
                          `single_block_budget_bytes`, otherwise auto-sized row tiling.
    """
    n, fin = x.shape
    hid = params["w1_sp"].shape[1]
    out_ch = params["w2_sp"].shape[1]

    fin_p = _round_up(fin, 128)
    hid_p = _round_up(hid, 128)
    out_p = _round_up(out_ch, 128)

    f32, bf16 = jnp.float32, jnp.bfloat16

    x_p = jnp.zeros((n, fin_p), f32).at[:, :fin].set(x).astype(bf16)

    def pad2(w, rows, cols):
        return jnp.zeros((rows, cols), f32).at[: w.shape[0], : w.shape[1]].set(w)

    w1_cat = jnp.concatenate(
        [pad2(params["w1_sp"], fin_p, hid_p),
         pad2(params["w1_si"], fin_p, hid_p)], axis=1).astype(bf16)      # (Fi, 2H)
    w2_cat = jnp.concatenate(
        [pad2(params["w2_sp"], hid_p, out_p),
         pad2(params["w2_si"], hid_p, out_p)], axis=1).astype(bf16)      # (H, 2O)
    b1 = pad2(0.5 * (params["b1_sp"] + params["b1_si"]), 1, hid_p)       # (1, H) f32
    b2 = pad2(0.5 * (params["b2_sp"] + params["b2_si"]), 1, out_p)       # (1, O) f32

    # Fused-path VMEM footprint: operands + kernel temporaries.
    footprint = (2 * n * n * 2 + n * fin_p * 2
                 + fin_p * 2 * hid_p * 2 + hid_p * 2 * out_p * 2 + (hid_p + out_p) * 4
                 + n * 2 * hid_p * 4 + n * hid_p * 2 + n * 2 * out_p * 4 + n * out_p * 4)

    if block_rows is None and footprint <= single_block_budget_bytes:
        # Everything (both adjacencies + both layers) stays on-chip; h never leaves VMEM.
        out_padded = _fused_forward(a_spatial, a_similar, x_p, w1_cat, b1, w2_cat, b2, footprint)
        return out_padded[:, :out_ch]

    # ---------------- row-tiled per-layer path (past the VMEM ceiling / v7x 2 TCs) ----------------
    if block_rows is None:
        block_rows = _pick_block_rows(n, n, max(hid_p, out_p), single_block_budget_bytes)
    block_rows = max(8, (int(block_rows) // 8) * 8)
    n_rows_p = _round_up(n, block_rows)

    def pad_rows(a):
        if n_rows_p == n:
            return a
        return jnp.zeros((n_rows_p, n), a.dtype).at[:n, :].set(a)

    a_sp_p = pad_rows(a_spatial)
    a_si_p = pad_rows(a_similar)

    # Layer 1: tiny feature transform in XLA, aggregation in Pallas over destination-row tiles.
    xw1 = jnp.dot(x_p, w1_cat, preferred_element_type=f32).astype(bf16)              # (N, 2H)
    h = _tiled_layer(a_sp_p, a_si_p, xw1, b1, relu=True, block_rows=block_rows)[:n]
    h = h.astype(bf16)

    # Layer 2 (adjacency streamed a second time — layer 2 needs the complete h).
    hw = jnp.dot(h, w2_cat, preferred_element_type=f32).astype(bf16)                 # (N, 2O)
    out_padded = _tiled_layer(a_sp_p, a_si_p, hw, b2, relu=False, block_rows=block_rows)
    return out_padded[:n, :out_ch]


# -------------------------------------- JAX glue --------------------------------------------------
def gcn_norm_dense(edge_index, num_nodes, *, scale=1.0, dtype=jnp.float32):
    """Dense D^{-1/2} (A + I) D^{-1/2}, matching PyG GCNConv's gcn_norm.

    The relation-mean factor (`scale`, 0.5 for two relations) and the output dtype (bf16 for
    the kernel) are folded in here: the scaling is applied per edge (O(E)), not as a separate
    O(N^2) pass over the dense adjacency in the wrapper.
    """
    src, dst = edge_index[0], edge_index[1]
    loop = jnp.arange(num_nodes, dtype=src.dtype)
    src = jnp.concatenate([src, loop])
    dst = jnp.concatenate([dst, loop])
    ones = jnp.ones(src.shape[0], dtype=jnp.float32)
    deg = jnp.zeros((num_nodes,), jnp.float32).at[dst].add(ones)
    dinv = jnp.where(deg > 0, 1.0 / jnp.sqrt(deg), 0.0)
    norm = (dinv[src] * dinv[dst]) * scale
    a = jnp.zeros((num_nodes, num_nodes), jnp.float32).at[dst, src].add(norm)
    return a.astype(dtype)


def _reference_forward(x, a0, a1, p):
    hp = jax.lax.Precision.HIGHEST

    def layer(xx, w0, w1, b0, b1, relu):
        h0 = jnp.dot(a0, jnp.dot(xx, w0, precision=hp), precision=hp) + b0
        h1 = jnp.dot(a1, jnp.dot(xx, w1, precision=hp), precision=hp) + b1
        h = 0.5 * (h0 + h1)
        return jnp.maximum(h, 0.0) if relu else h

    h = layer(x, p["w1_sp"], p["w1_si"], p["b1_sp"], p["b1_si"], True)
    return layer(h, p["w2_sp"], p["w2_si"], p["b2_sp"], p["b2_si"], False)


# ---------------------------------------- main ----------------------------------------------------
if __name__ == "__main__":
    # Small synthetic shapes (module uses hidden_channels=256; scaled down here).
    N = 64          # number of 'cell' nodes
    IN_CH = 16      # in_channels
    HID = 32        # hidden_channels
    OUT_CH = 4      # out_channels = y.max()+1

    key = jax.random.PRNGKey(0)
    k = iter(jax.random.split(key, 10))

    x = jax.random.normal(next(k), (N, IN_CH), dtype=jnp.float32)

    # Synthetic edge indices for the two relations (2, E), like PyG edge_index.
    e_spatial = jax.random.randint(next(k), (2, 128), 0, N, dtype=jnp.int32)
    e_similar = jax.random.randint(next(k), (2, 96), 0, N, dtype=jnp.int32)

    # f32 unscaled adjacencies for the reference; bf16 0.5-prescaled ones for the kernel.
    a_spatial_f32 = gcn_norm_dense(e_spatial, N)
    a_similar_f32 = gcn_norm_dense(e_similar, N)
    a_spatial_k = gcn_norm_dense(e_spatial, N, scale=0.5, dtype=jnp.bfloat16)
    a_similar_k = gcn_norm_dense(e_similar, N, scale=0.5, dtype=jnp.bfloat16)

    def glorot(kk, fan_in, fan_out):
        scale = jnp.sqrt(2.0 / (fan_in + fan_out))
        return scale * jax.random.normal(kk, (fan_in, fan_out), dtype=jnp.float32)

    params = {
        "w1_sp": glorot(next(k), IN_CH, HID),
        "w1_si": glorot(next(k), IN_CH, HID),
        "b1_sp": jnp.zeros((1, HID), jnp.float32),
        "b1_si": jnp.zeros((1, HID), jnp.float32),
        "w2_sp": glorot(next(k), HID, OUT_CH),
        "w2_si": glorot(next(k), HID, OUT_CH),
        "b2_sp": jnp.zeros((1, OUT_CH), jnp.float32),
        "b2_si": jnp.zeros((1, OUT_CH), jnp.float32),
    }

    ref = _reference_forward(x, a_spatial_f32, a_similar_f32, params)

    # Path 1: fused single-VMEM-block kernel (everything fits on-chip at these shapes).
    out_fused = jax.jit(hetero_rgcn_forward)(x, a_spatial_k, a_similar_k, params)
    out_fused = jax.block_until_ready(out_fused)
    assert out_fused.shape == (N, OUT_CH)
    assert jnp.allclose(out_fused, ref, rtol=2e-2, atol=2e-2), "fused path mismatch vs reference"

    # Path 2: row-tiled per-layer path (the structure used when the adjacency exceeds VMEM and,
    # on v7x, to shard destination-row tiles across both TensorCores), forced here with tm=32.
    tiled_fn = jax.jit(functools.partial(hetero_rgcn_forward, block_rows=32))
    out_tiled = jax.block_until_ready(tiled_fn(x, a_spatial_k, a_similar_k, params))
    assert out_tiled.shape == (N, OUT_CH)
    assert jnp.allclose(out_tiled, ref, rtol=2e-2, atol=2e-2), "tiled path mismatch vs reference"

    print("KERNEL_OK")
</pallas_src>

<mosaic_0001>
module attributes {stable_mosaic.version = 11 : i64} {
  func.func @_fused_two_layer_kernel(%arg0: memref<64x64xbf16, #tpu.memory_space<vmem>>, %arg1: memref<64x64xbf16, #tpu.memory_space<vmem>>, %arg2: memref<64x128xbf16, #tpu.memory_space<vmem>>, %arg3: memref<128x256xbf16, #tpu.memory_space<vmem>>, %arg4: memref<1x128xf32, #tpu.memory_space<vmem>>, %arg5: memref<128x256xbf16, #tpu.memory_space<vmem>>, %arg6: memref<1x128xf32, #tpu.memory_space<vmem>>, %arg7: memref<64x128xf32, #tpu.memory_space<vmem>>) attributes {dimension_semantics = [], scalar_prefetch = 0 : i64, scratch_operands = 0 : i64, tpu.core_type = #tpu.core_type<tc>} {
    %c0 = arith.constant 0 : index
    %c0_0 = arith.constant 0 : index
    %0 = vector.load %arg0[%c0, %c0_0] : memref<64x64xbf16, #tpu.memory_space<vmem>>, vector<64x64xbf16>
    %c0_1 = arith.constant 0 : index
    %c0_2 = arith.constant 0 : index
    %1 = vector.load %arg1[%c0_1, %c0_2] : memref<64x64xbf16, #tpu.memory_space<vmem>>, vector<64x64xbf16>
    %c0_3 = arith.constant 0 : index
    %c0_4 = arith.constant 0 : index
    %2 = vector.load %arg2[%c0_3, %c0_4] : memref<64x128xbf16, #tpu.memory_space<vmem>>, vector<64x128xbf16>
    %c0_5 = arith.constant 0 : index
    %c0_6 = arith.constant 0 : index
    %3 = vector.load %arg3[%c0_5, %c0_6] : memref<128x256xbf16, #tpu.memory_space<vmem>>, vector<128x256xbf16>
    %cst = arith.constant dense<0.000000e+00> : vector<64x256xf32>
    %4 = tpu.matmul %2, %3, %cst {dimension_numbers = #tpu.dot_dimension_numbers<[1], [0], [0], [1], [0, 0, 1, 1], [], []>} : vector<64x128xbf16>, vector<128x256xbf16>, vector<64x256xf32> -> vector<64x256xf32>
    %5 = vector.extract_strided_slice %4 {offsets = [0, 0], sizes = [64, 128], strides = [1, 1]} : vector<64x256xf32> to vector<64x128xf32>
    %6 = arith.truncf %5 : vector<64x128xf32> to vector<64x128xbf16>
    %cst_7 = arith.constant dense<0.000000e+00> : vector<64x128xf32>
    %7 = tpu.matmul %0, %6, %cst_7 {dimension_numbers = #tpu.dot_dimension_numbers<[1], [0], [0], [1], [0, 0, 1, 1], [], []>} : vector<64x64xbf16>, vector<64x128xbf16>, vector<64x128xf32> -> vector<64x128xf32>
    %8 = vector.extract_strided_slice %4 {offsets = [0, 128], sizes = [64, 128], strides = [1, 1]} : vector<64x256xf32> to vector<64x128xf32>
    %9 = arith.truncf %8 : vector<64x128xf32> to vector<64x128xbf16>
    %cst_8 = arith.constant dense<0.000000e+00> : vector<64x128xf32>
    %10 = tpu.matmul %1, %9, %cst_8 {dimension_numbers = #tpu.dot_dimension_numbers<[1], [0], [0], [1], [0, 0, 1, 1], [], []>} : vector<64x64xbf16>, vector<64x128xbf16>, vector<64x128xf32> -> vector<64x128xf32>
    %11 = arith.addf %7, %10 : vector<64x128xf32>
    %c0_9 = arith.constant 0 : index
    %c0_10 = arith.constant 0 : index
    %12 = vector.load %arg4[%c0_9, %c0_10] : memref<1x128xf32, #tpu.memory_space<vmem>>, vector<1x128xf32>
    %13 = vector.broadcast %12 : vector<1x128xf32> to vector<64x128xf32>
    %14 = arith.addf %11, %13 : vector<64x128xf32>
    %cst_11 = arith.constant 0.000000e+00 : f32
    %15 = vector.broadcast %cst_11 : f32 to vector<64x128xf32>
    %16 = arith.maximumf %14, %15 : vector<64x128xf32>
    %17 = arith.truncf %16 : vector<64x128xf32> to vector<64x128xbf16>
    %c0_12 = arith.constant 0 : index
    %c0_13 = arith.constant 0 : index
    %18 = vector.load %arg5[%c0_12, %c0_13] : memref<128x256xbf16, #tpu.memory_space<vmem>>, vector<128x256xbf16>
    %cst_14 = arith.constant dense<0.000000e+00> : vector<64x256xf32>
    %19 = tpu.matmul %17, %18, %cst_14 {dimension_numbers = #tpu.dot_dimension_numbers<[1], [0], [0], [1], [0, 0, 1, 1], [], []>} : vector<64x128xbf16>, vector<128x256xbf16>, vector<64x256xf32> -> vector<64x256xf32>
    %20 = vector.extract_strided_slice %19 {offsets = [0, 0], sizes = [64, 128], strides = [1, 1]} : vector<64x256xf32> to vector<64x128xf32>
    %21 = arith.truncf %20 : vector<64x128xf32> to vector<64x128xbf16>
    %cst_15 = arith.constant dense<0.000000e+00> : vector<64x128xf32>
    %22 = tpu.matmul %0, %21, %cst_15 {dimension_numbers = #tpu.dot_dimension_numbers<[1], [0], [0], [1], [0, 0, 1, 1], [], []>} : vector<64x64xbf16>, vector<64x128xbf16>, vector<64x128xf32> -> vector<64x128xf32>
    %23 = vector.extract_strided_slice %19 {offsets = [0, 128], sizes = [64, 128], strides = [1, 1]} : vector<64x256xf32> to vector<64x128xf32>
    %24 = arith.truncf %23 : vector<64x128xf32> to vector<64x128xbf16>
    %cst_16 = arith.constant dense<0.000000e+00> : vector<64x128xf32>
    %25 = tpu.matmul %1, %24, %cst_16 {dimension_numbers = #tpu.dot_dimension_numbers<[1], [0], [0], [1], [0, 0, 1, 1], [], []>} : vector<64x64xbf16>, vector<64x128xbf16>, vector<64x128xf32> -> vector<64x128xf32>
    %26 = arith.addf %22, %25 : vector<64x128xf32>
    %c0_17 = arith.constant 0 : index
    %c0_18 = arith.constant 0 : index
    %27 = vector.load %arg6[%c0_17, %c0_18] : memref<1x128xf32, #tpu.memory_space<vmem>>, vector<1x128xf32>
    %28 = vector.broadcast %27 : vector<1x128xf32> to vector<64x128xf32>
    %29 = arith.addf %26, %28 : vector<64x128xf32>
    %c0_19 = arith.constant 0 : index
    %c0_20 = arith.constant 0 : index
    %30 = vector.load %arg7[%c0_19, %c0_20] : memref<64x128xf32, #tpu.memory_space<vmem>>, vector<64x128xf32>
    tpu.vector_store %arg7[%c0_19, %c0_20], %29 {strides = array<i32>} : memref<64x128xf32, #tpu.memory_space<vmem>>, vector<64x128xf32>,
    return
  }
}

</mosaic_0001>

<bundles_post_ra>
// kernel: hetero_rgcn_forward.1
= control target key start
LH: loop header
LB: loop body
LE: loop exit
PB: predicated region body
PF: predicated region fallthrough
CT: control target
= control target key end

     0   :  { %vm257_vm0 = vcmask 523264   ;;  %s1212_s3 = inlined_call_operand.vmem [shape: bf16[128,256], index: 3, kind: input, shape index: {}]   ;;  %s1213_s2 = inlined_call_operand.vmem [shape: bf16[64,128], index: 2, kind: input, shape index: {}]   ;;  %s1214_s0 = inlined_call_operand.vmem [shape: bf16[64,64], index: 0, kind: input, shape index: {}]   ;;  %s1215_s1 = inlined_call_operand.vmem [shape: bf16[64,64], index: 1, kind: input, shape index: {}]   ;;  %s1216_s4 = inlined_call_operand.vmem [shape: f32[1,128], index: 4, kind: input, shape index: {}]   ;;  %s1217_s5 = inlined_call_operand.vmem [shape: bf16[128,256], index: 5, kind: input, shape index: {}]   ;;  %s1218_s6 = inlined_call_operand.vmem [shape: f32[1,128], index: 6, kind: input, shape index: {}]   ;;  %s1219_s7 = inlined_call_operand.vmem [shape: f32[64,128], index: 7, kind: output, shape index: {}]  }
   0x1   :  { %v702_v0 = vld [vmem:[%s1212_s3 + $0x70] sm:$0xf]  ;;  %v847_v1 = vld [vmem:[%s1212_s3 + $0x74] sm:$0xf0]  ;;  %v846_v2 = vld [vmem:[%s1212_s3 + $0x74] sm:$0xf] }
   0x2   :  { %v703_v3 = vor.u32 %v847_v1, %v702_v0  ;;  %v704_v4 = vld [vmem:[%s1212_s3 + $0x78] sm:$0xf0]  ;;  %v694_v5 = vld [vmem:[%s1212_s3 + $0x60] sm:$0xf]  ;;  %v845_v6 = vld [vmem:[%s1212_s3 + $0x64] sm:$0xf0] }
   0x3   :  { %v707_v7 = vor.u32 %v846_v2, %v704_v4  ;;  %v844_v8 = vld [vmem:[%s1212_s3 + $0x64] sm:$0xf]  ;;  %v696_v9 = vld [vmem:[%s1212_s3 + $0x68] sm:$0xf0]  ;;  %v695_v10 = vor.u32 %v845_v6, %v694_v5  ;;  %v686_v12 = vld [vmem:[%s1212_s3 + $0x50] sm:$0xf] }
   0x4   :  { %171 = vmatpush.bf16.msra.mxu0 %v703_v3  ;;  %v699_v11 = vor.u32 %v844_v8, %v696_v9  ;;  %v843_v13 = vld [vmem:[%s1212_s3 + $0x54] sm:$0xf0]  ;;  %v842_v14 = vld [vmem:[%s1212_s3 + $0x54] sm:$0xf]  ;;  %v688_v15 = vld [vmem:[%s1212_s3 + $0x58] sm:$0xf0] }
   0x5   :  { %200 = vmatpush.bf16.msra.mxu1 %v707_v7  ;;  %v687_v16 = vor.u32 %v843_v13, %v686_v12  ;;  %v691_v17 = vor.u32 %v842_v14, %v688_v15  ;;  %v678_v18 = vld [vmem:[%s1212_s3 + $0x40] sm:$0xf]  ;;  %v841_v19 = vld [vmem:[%s1212_s3 + $0x44] sm:$0xf0]  ;;  %v840_v20 = vld [vmem:[%s1212_s3 + $0x44] sm:$0xf] }
   0x6   :  { %v680_v21 = vld [vmem:[%s1212_s3 + $0x48] sm:$0xf0]  ;;  %v679_v22 = vor.u32 %v841_v19, %v678_v18  ;;  %v670_v24 = vld [vmem:[%s1212_s3 + $0x30] sm:$0xf]  ;;  %v839_v25 = vld [vmem:[%s1212_s3 + $0x34] sm:$0xf0] }
   0x7   :  { %v683_v23 = vor.u32 %v840_v20, %v680_v21  ;;  %v838_v26 = vld [vmem:[%s1212_s3 + $0x34] sm:$0xf]  ;;  %v672_v27 = vld [vmem:[%s1212_s3 + $0x38] sm:$0xf0]  ;;  %v671_v28 = vor.u32 %v839_v25, %v670_v24  ;;  %v662_v30 = vld [vmem:[%s1212_s3 + $0x20] sm:$0xf] }
   0x8   :  { %172 = vmatpush.bf16.msra.mxu0 %v695_v10  ;;  %v675_v29 = vor.u32 %v838_v26, %v672_v27  ;;  %v837_v31 = vld [vmem:[%s1212_s3 + $0x24] sm:$0xf0]  ;;  %v836_v32 = vld [vmem:[%s1212_s3 + $0x24] sm:$0xf]  ;;  %v664_v33 = vld [vmem:[%s1212_s3 + $0x28] sm:$0xf0] }
   0x9   :  { %201 = vmatpush.bf16.msra.mxu1 %v699_v11  ;;  %v663_v34 = vor.u32 %v837_v31, %v662_v30  ;;  %v667_v35 = vor.u32 %v836_v32, %v664_v33  ;;  %v654_v36 = vld [vmem:[%s1212_s3 + $0x10] sm:$0xf]  ;;  %v835_v37 = vld [vmem:[%s1212_s3 + $0x14] sm:$0xf0]  ;;  %v834_v38 = vld [vmem:[%s1212_s3 + $0x14] sm:$0xf] }
   0xa   :  { %v656_v39 = vld [vmem:[%s1212_s3 + $0x18] sm:$0xf0]  ;;  %v655_v40 = vor.u32 %v835_v37, %v654_v36  ;;  %v646_v42 = vld [vmem:[%s1212_s3] sm:$0xf]  ;;  %v833_v43 = vld [vmem:[%s1212_s3 + $0x4] sm:$0xf0] }
   0xb   :  { %v659_v41 = vor.u32 %v834_v38, %v656_v39  ;;  %v832_v44 = vld [vmem:[%s1212_s3 + $0x4] sm:$0xf]  ;;  %v648_v45 = vld [vmem:[%s1212_s3 + $0x8] sm:$0xf0]  ;;  %v647_v46 = vor.u32 %v833_v43, %v646_v42  ;;  %v830_v50 = vld [vmem:[%s1213_s2 + $0x10] sm:$0xff] }
   0xc   :  { %173 = vmatpush.bf16.msra.mxu0 %v687_v16  ;;  %v651_v47 = vor.u32 %v832_v44, %v648_v45  ;;  %v828_v48 = vld [vmem:[%s1213_s2] sm:$0xff]  ;;  %v829_v49 = vld [vmem:[%s1213_s2 + $0x8] sm:$0xff]  ;;  %v831_v51 = vld [vmem:[%s1213_s2 + $0x18] sm:$0xff] }
   0xd   :  { %202 = vmatpush.bf16.msra.mxu1 %v691_v17  ;;  %v1017_v12 = vld [vmem:[%s1214_s0] sm:$0xff]  ;;  %v1031_v14 = vld [vmem:[%s1214_s0 + $0x8] sm:$0xff]  ;;  %v806_v16 = vld [vmem:[%s1217_s5 + $0x70] sm:$0xf] }
   0xe   :  { %v1022_v13 = vld [vmem:[%s1215_s1] sm:$0xff]  ;;  %v1036_v15 = vld [vmem:[%s1215_s1 + $0x8] sm:$0xff]  ;;  %v863_v17 = vld [vmem:[%s1217_s5 + $0x74] sm:$0xf0] }
   0xf   :  { %v862_v18 = vld [vmem:[%s1217_s5 + $0x74] sm:$0xf]  ;;  %v807_v19 = vor.u32 %v863_v17, %v806_v16  ;;  %v808_v20 = vld [vmem:[%s1217_s5 + $0x78] sm:$0xf0]  ;;  %v798_v21 = vld [vmem:[%s1217_s5 + $0x60] sm:$0xf] }
  0x10   :  { %174 = vmatpush.bf16.msra.mxu0 %v679_v22  ;;  %v861_v22 = vld [vmem:[%s1217_s5 + $0x64] sm:$0xf0]  ;;  %v860_v24 = vld [vmem:[%s1217_s5 + $0x64] sm:$0xf]  ;;  %v800_v25 = vld [vmem:[%s1217_s5 + $0x68] sm:$0xf0] }
  0x11   :  { %203 = vmatpush.bf16.msra.mxu1 %v683_v23  ;;  %v811_v23 = vor.u32 %v862_v18, %v808_v20  ;;  %v799_v26 = vor.u32 %v861_v22, %v798_v21  ;;  %v803_v27 = vor.u32 %v860_v24, %v800_v25  ;;  %v858_v30 = vld [vmem:[%s1217_s5 + $0x54] sm:$0xf]  ;;  %v792_v31 = vld [vmem:[%s1217_s5 + $0x58] sm:$0xf0]  ;;  %v856_v36 = vld [vmem:[%s1217_s5 + $0x44] sm:$0xf] }
  0x12   :  { %v795_v33 = vor.u32 %v858_v30, %v792_v31  ;;  %v784_v37 = vld [vmem:[%s1217_s5 + $0x48] sm:$0xf0]  ;;  %v1093_v38 = vld [vmem:[%s1214_s0 + $0x10] sm:$0xff]  ;;  %v1107_v42 = vld [vmem:[%s1214_s0 + $0x18] sm:$0xff] }
  0x13   :  { %v1112_v43 = vld [vmem:[%s1215_s1 + $0x18] sm:$0xff]  ;;  %v774_v44 = vld [vmem:[%s1217_s5 + $0x30] sm:$0xf] }
  0x14   :  { %175 = vmatpush.bf16.msra.mxu0 %v671_v28  ;;  %v790_v28 = vld [vmem:[%s1217_s5 + $0x50] sm:$0xf]  ;;  %v855_v45 = vld [vmem:[%s1217_s5 + $0x34] sm:$0xf0] }
  0x15   :  { %204 = vmatpush.bf16.msra.mxu1 %v675_v29  ;;  %v859_v29 = vld [vmem:[%s1217_s5 + $0x54] sm:$0xf0] }
  0x16   :  { %v791_v32 = vor.u32 %v859_v29, %v790_v28 }
  0x18   :  { %176 = vmatpush.bf16.msra.mxu0 %v663_v34  ;;  %v782_v34 = vld [vmem:[%s1217_s5 + $0x40] sm:$0xf] }
  0x19   :  { %205 = vmatpush.bf16.msra.mxu1 %v667_v35  ;;  %v857_v35 = vld [vmem:[%s1217_s5 + $0x44] sm:$0xf0] }
  0x1a   :  { %v783_v39 = vor.u32 %v857_v35, %v782_v34 }
  0x1c   :  { %177 = vmatpush.bf16.msra.mxu0 %v655_v40  ;;  %v1098_v40 = vld [vmem:[%s1215_s1 + $0x10] sm:$0xff] }
  0x1d   :  { %206 = vmatpush.bf16.msra.mxu1 %v659_v41  ;;  %v787_v41 = vor.u32 %v856_v36, %v784_v37 }
  0x20   :  { %178 = vmatpush.bf16.msra.mxu0 %v647_v46  ;;  %v854_v46 = vld [vmem:[%s1217_s5 + $0x34] sm:$0xf] }
  0x21   :  { %207 = vmatpush.bf16.msra.mxu1 %v651_v47  ;;  %v775_v47 = vor.u32 %v855_v45, %v774_v44 }
  0x23   :  { %179 = vmatmul.bf16.vlgmr.msra.gmra.mxu0 %v828_v48 }
  0x24   :  { %208 = vmatmul.bf16.vlgmr.msra.gmra.mxu1 %v828_v48  ;;  %v776_v48 = vld [vmem:[%s1217_s5 + $0x38] sm:$0xf0] }
  0x33   :  { %184 = vmatmul.bf16.gmra.mxu0 %v829_v49 }
  0x34   :  { %213 = vmatmul.bf16.gmra.mxu1 %v829_v49  ;;  %v779_v49 = vor.u32 %v854_v46, %v776_v48 }
  0x43   :  { %189 = vmatmul.bf16.gmra.mxu0 %v830_v50 }
  0x44   :  { %218 = vmatmul.bf16.gmra.mxu1 %v830_v50  ;;  %v766_v50 = vld [vmem:[%s1217_s5 + $0x20] sm:$0xf] }
  0x53   :  { %194 = vmatmul.bf16.gmra.mxu0 %v831_v51 }
  0x54   :  { %223 = vmatmul.bf16.gmra.mxu1 %v831_v51  ;;  %v853_v51 = vld [vmem:[%s1217_s5 + $0x24] sm:$0xf0] }
  0xa0   :  { %v180_v52 = vpop.f32.mrf.mxu0 }
  0xa1   :  { %v209_v53 = vpop.f32.mrf.mxu1 }
  0xa8   :  { %v182_v54 = vpop.f32.mrf.mxu0 }
  0xa9   :  { %v211_v55 = vpop.f32.mrf.mxu1  ;;  %v229_v10 = vpack.c.bf16 %v182_v54, %v180_v52  ;;  %v852_v52 = vld [vmem:[%s1217_s5 + $0x24] sm:$0xf]  ;;  %v768_v54 = vld [vmem:[%s1217_s5 + $0x28] sm:$0xf0] }
  0xaa   :  { %v233_v11 = vpack.c.bf16 %v211_v55, %v209_v53  ;;  %v767_v53 = vor.u32 %v853_v51, %v766_v50  ;;  %v771_v55 = vor.u32 %v852_v52, %v768_v54 }
  0xb0   :  { %v185_v56 = vpop.f32.mrf.mxu0 }
  0xb1   :  { %v214_v57 = vpop.f32.mrf.mxu1 }
  0xb8   :  { %v187_v58 = vpop.f32.mrf.mxu0 }
  0xb9   :  { %v216_v59 = vpop.f32.mrf.mxu1  ;;  %v230_v8 = vpack.c.bf16 %v187_v58, %v185_v56  ;;  %v758_v56 = vld [vmem:[%s1217_s5 + $0x10] sm:$0xf]  ;;  %v850_v58 = vld [vmem:[%s1217_s5 + $0x14] sm:$0xf] }
  0xba   :  { %v234_v9 = vpack.c.bf16 %v216_v59, %v214_v57  ;;  %v851_v57 = vld [vmem:[%s1217_s5 + $0x14] sm:$0xf0] }
  0xbb   :  { %v759_v59 = vor.u32 %v851_v57, %v758_v56 }
  0xc0   :  { %v190_v60 = vpop.f32.mrf.mxu0 }
  0xc1   :  { %v219_v61 = vpop.f32.mrf.mxu1 }
  0xc8   :  { %v192_v62 = vpop.f32.mrf.mxu0 }
  0xc9   :  { %v221_v63 = vpop.f32.mrf.mxu1  ;;  %v231_v6 = vpack.c.bf16 %v192_v62, %v190_v60  ;;  %v760_v60 = vld [vmem:[%s1217_s5 + $0x18] sm:$0xf0]  ;;  %v750_v62 = vld [vmem:[%s1217_s5] sm:$0xf] }
  0xca   :  { %v235_v7 = vpack.c.bf16 %v221_v63, %v219_v61  ;;  %v763_v61 = vor.u32 %v850_v58, %v760_v60  ;;  %v849_v63 = vld [vmem:[%s1217_s5 + $0x4] sm:$0xf0] }
  0xd0   :  { %v195_v0 = vpop.f32.mrf.mxu0 }
  0xd1   :  { %v224_v1 = vpop.f32.mrf.mxu1 }
  0xd8   :  { %v197_v2 = vpop.f32.mrf.mxu0 }
  0xd9   :  { %v226_v3 = vpop.f32.mrf.mxu1  ;;  %v232_v4 = vpack.c.bf16 %v197_v2, %v195_v0  ;;  %v848_v0 = vld [vmem:[%s1217_s5 + $0x4] sm:$0xf]  ;;  %v752_v2 = vld [vmem:[%s1217_s5 + $0x8] sm:$0xf0] }
  0xda   :  { %v236_v5 = vpack.c.bf16 %v226_v3, %v224_v1  ;;  %v751_v1 = vor.u32 %v849_v63, %v750_v62  ;;  %v755_v3 = vor.u32 %v848_v0, %v752_v2 }
  0xdb   :  { %335 = vmatpush.bf16.msra.mxu3 %v232_v4 }
  0xdc   :  { %274 = vmatpush.bf16.msra.mxu2 %v236_v5 }
  0xdf   :  { %336 = vmatpush.bf16.msra.mxu3 %v231_v6 }
  0xe0   :  { %275 = vmatpush.bf16.msra.mxu2 %v235_v7  ;;  %v864_v7 = vld [vmem:[%s1216_s4] ss:$0 sm:$0xff] }
  0xe3   :  { %337 = vmatpush.bf16.msra.mxu3 %v230_v8 }
  0xe4   :  { %276 = vmatpush.bf16.msra.mxu2 %v234_v9 }
  0xe7   :  { %338 = vmatpush.bf16.msra.mxu3 %v229_v10 }
  0xe8   :  { %277 = vmatpush.bf16.msra.mxu2 %v233_v11 }
  0xea   :  { %744 = vmatmul.msk.bf16.vlgmr.msra.gmra.mxu3 %vm257_vm0, %v1017_v12 }
  0xeb   :  { %724 = vmatmul.msk.bf16.vlgmr.msra.gmra.mxu2 %vm257_vm0, %v1022_v13  ;;  %509 = vmatpush.bf16.msrb.mxu3 %v811_v23 }
  0xec   :  { %480 = vmatpush.bf16.msrb.mxu2 %v807_v19 }
  0xef   :  { %510 = vmatpush.bf16.msrb.mxu3 %v803_v27 }
  0xf0   :  { %481 = vmatpush.bf16.msrb.mxu2 %v799_v26 }
  0xf3   :  { %511 = vmatpush.bf16.msrb.mxu3 %v795_v33 }
  0xf4   :  { %482 = vmatpush.bf16.msrb.mxu2 %v791_v32 }
  0xf7   :  { %512 = vmatpush.bf16.msrb.mxu3 %v787_v41 }
  0xf8   :  { %483 = vmatpush.bf16.msrb.mxu2 %v783_v39 }
  0xfa   :  { %745 = vmatmul.msk.bf16.gmra.mxu3 %vm257_vm0, %v1031_v14 }
  0xfb   :  { %725 = vmatmul.msk.bf16.gmra.mxu2 %vm257_vm0, %v1036_v15  ;;  %513 = vmatpush.bf16.msrb.mxu3 %v779_v49 }
  0xfc   :  { %484 = vmatpush.bf16.msrb.mxu2 %v775_v47 }
  0xff   :  { %514 = vmatpush.bf16.msrb.mxu3 %v771_v55 }
 0x100   :  { %485 = vmatpush.bf16.msrb.mxu2 %v767_v53 }
 0x103   :  { %515 = vmatpush.bf16.msrb.mxu3 %v763_v61 }
 0x104   :  { %486 = vmatpush.bf16.msrb.mxu2 %v759_v59 }
 0x107   :  { %516 = vmatpush.bf16.msrb.mxu3 %v755_v3 }
 0x108   :  { %487 = vmatpush.bf16.msrb.mxu2 %v751_v1 }
 0x10a   :  { %746 = vmatmul.msk.bf16.gmra.mxu3 %vm257_vm0, %v1093_v38 }
 0x10b   :  { %726 = vmatmul.msk.bf16.gmra.mxu2 %vm257_vm0, %v1098_v40 }
 0x11a   :  { %747 = vmatmul.msk.bf16.gmra.mxu3 %vm257_vm0, %v1107_v42 }
 0x11b   :  { %727 = vmatmul.msk.bf16.gmra.mxu2 %vm257_vm0, %v1112_v43 }
 0x16d   :  { %v340_v4 = vpop.f32.mrf.mxu3 }
 0x16e   :  { %v279_v5 = vpop.f32.mrf.mxu2 }
 0x16f   :  { %v341_v6 = vadd.f32 %v340_v4, %v279_v5 }
 0x171   :  { %v364_v10 = vadd.f32 %v864_v7, %v341_v6 }
 0x173   :  { %v372_v17 = vmax.f32 %v364_v10, 0.0 }
 0x175   :  { %v342_v8 = vpop.f32.mrf.mxu3 }
 0x176   :  { %v281_v9 = vpop.f32.mrf.mxu2 }
 0x177   :  { %v343_v11 = vadd.f32 %v342_v8, %v281_v9 }
 0x179   :  { %v365_v16 = vadd.f32 %v864_v7, %v343_v11 }
 0x17b   :  { %v373_v18 = vmax.f32 %v365_v16, 0.0 }
 0x17d   :  { %v345_v19 = vpop.f32.mrf.mxu3  ;;  %v380_v20 = vpack.c.bf16 %v373_v18, %v372_v17 }
 0x17e   :  { %v284_v21 = vpop.f32.mrf.mxu2 }
 0x17f   :  { %488 = vmatmul.bf16.vlgmr.msrb.gmra.mxu2 %v380_v20  ;;  %517 = vmatmul.bf16.vlgmr.msrb.gmra.mxu3 %v380_v20  ;;  %v346_v22 = vadd.f32 %v345_v19, %v284_v21 }
 0x181   :  { %v366_v25 = vadd.f32 %v864_v7, %v346_v22 }
 0x183   :  { %v374_v28 = vmax.f32 %v366_v25, 0.0 }
 0x185   :  { %v347_v23 = vpop.f32.mrf.mxu3 }
 0x186   :  { %v286_v24 = vpop.f32.mrf.mxu2 }
 0x187   :  { %v348_v26 = vadd.f32 %v347_v23, %v286_v24 }
 0x189   :  { %v367_v27 = vadd.f32 %v864_v7, %v348_v26 }
 0x18b   :  { %v375_v29 = vmax.f32 %v367_v27, 0.0 }
 0x18d   :  { %v350_v30 = vpop.f32.mrf.mxu3  ;;  %v381_v31 = vpack.c.bf16 %v375_v29, %v374_v28 }
 0x18e   :  { %v289_v32 = vpop.f32.mrf.mxu2 }
 0x18f   :  { %493 = vmatmul.bf16.gmra.mxu2 %v381_v31  ;;  %522 = vmatmul.bf16.gmra.mxu3 %v381_v31  ;;  %v351_v33 = vadd.f32 %v350_v30, %v289_v32 }
 0x191   :  { %v368_v36 = vadd.f32 %v864_v7, %v351_v33 }
 0x193   :  { %v376_v41 = vmax.f32 %v368_v36, 0.0 }
 0x195   :  { %v352_v34 = vpop.f32.mrf.mxu3 }
 0x196   :  { %v291_v35 = vpop.f32.mrf.mxu2 }
 0x197   :  { %v353_v37 = vadd.f32 %v352_v34, %v291_v35 }
 0x199   :  { %v369_v39 = vadd.f32 %v864_v7, %v353_v37 }
 0x19b   :  { %v377_v44 = vmax.f32 %v369_v39, 0.0 }
 0x19d   :  { %v355_v45 = vpop.f32.mrf.mxu3  ;;  %v382_v46 = vpack.c.bf16 %v377_v44, %v376_v41 }
 0x19e   :  { %v294_v47 = vpop.f32.mrf.mxu2 }
 0x19f   :  { %498 = vmatmul.bf16.gmra.mxu2 %v382_v46  ;;  %527 = vmatmul.bf16.gmra.mxu3 %v382_v46  ;;  %v356_v48 = vadd.f32 %v355_v45, %v294_v47 }
 0x1a1   :  { %v370_v51 = vadd.f32 %v864_v7, %v356_v48 }
 0x1a3   :  { %v378_v54 = vmax.f32 %v370_v51, 0.0 }
 0x1a5   :  { %v357_v49 = vpop.f32.mrf.mxu3 }
 0x1a6   :  { %v296_v50 = vpop.f32.mrf.mxu2 }
 0x1a7   :  { %v358_v52 = vadd.f32 %v357_v49, %v296_v50 }
 0x1a9   :  { %v371_v53 = vadd.f32 %v864_v7, %v358_v52 }
 0x1ab   :  { %v379_v55 = vmax.f32 %v371_v53, 0.0 }
 0x1ad   :  { %v383_v56 = vpack.c.bf16 %v379_v55, %v378_v54 }
 0x1af   :  { %503 = vmatmul.bf16.gmra.mxu2 %v383_v56  ;;  %532 = vmatmul.bf16.gmra.mxu3 %v383_v56 }
 0x202   :  { %v489_v57 = vpop.f32.mrf.mxu2  ;;  %v518_v58 = vpop.f32.mrf.mxu3 }
 0x20a   :  { %v491_v59 = vpop.f32.mrf.mxu2  ;;  %v520_v60 = vpop.f32.mrf.mxu3 }
 0x20b   :  { %v538_v19 = vpack.c.bf16 %v491_v59, %v489_v57  ;;  %v542_v20 = vpack.c.bf16 %v520_v60, %v518_v58 }
 0x212   :  { %v494_v61 = vpop.f32.mrf.mxu2  ;;  %v523_v62 = vpop.f32.mrf.mxu3 }
 0x21a   :  { %v496_v63 = vpop.f32.mrf.mxu2  ;;  %v525_v0 = vpop.f32.mrf.mxu3 }
 0x21b   :  { %v539_v17 = vpack.c.bf16 %v496_v63, %v494_v61  ;;  %v543_v18 = vpack.c.bf16 %v525_v0, %v523_v62 }
 0x222   :  { %v499_v1 = vpop.f32.mrf.mxu2  ;;  %v528_v2 = vpop.f32.mrf.mxu3 }
 0x22a   :  { %v501_v3 = vpop.f32.mrf.mxu2  ;;  %v530_v4 = vpop.f32.mrf.mxu3 }
 0x22b   :  { %v540_v11 = vpack.c.bf16 %v501_v3, %v499_v1  ;;  %v544_v16 = vpack.c.bf16 %v530_v4, %v528_v2 }
 0x232   :  { %v504_v5 = vpop.f32.mrf.mxu2  ;;  %v533_v6 = vpop.f32.mrf.mxu3 }
 0x23a   :  { %v506_v7 = vpop.f32.mrf.mxu2  ;;  %v535_v8 = vpop.f32.mrf.mxu3 }
 0x23b   :  { %v541_v9 = vpack.c.bf16 %v506_v7, %v504_v5  ;;  %v545_v10 = vpack.c.bf16 %v535_v8, %v533_v6 }
 0x23d   :  { %550 = vmatpush.bf16.msrb.mxu0 %v545_v10  ;;  %579 = vmatpush.bf16.msrb.mxu1 %v541_v9 }
 0x241   :  { %551 = vmatpush.bf16.msrb.mxu0 %v544_v16  ;;  %580 = vmatpush.bf16.msrb.mxu1 %v540_v11 }
 0x245   :  { %552 = vmatpush.bf16.msrb.mxu0 %v543_v18  ;;  %581 = vmatpush.bf16.msrb.mxu1 %v539_v17 }
 0x249   :  { %553 = vmatpush.bf16.msrb.mxu0 %v542_v20  ;;  %582 = vmatpush.bf16.msrb.mxu1 %v538_v19 }
 0x24c   :  { %812 = vmatmul.msk.bf16.vlgmr.msrb.gmra.mxu0 %vm257_vm0, %v1022_v13  ;;  %816 = vmatmul.msk.bf16.vlgmr.msrb.gmra.mxu1 %vm257_vm0, %v1017_v12  ;;  %v865_v12 = vld [vmem:[%s1218_s6] ss:$0 sm:$0xff] }
 0x25c   :  { %813 = vmatmul.msk.bf16.gmra.mxu0 %vm257_vm0, %v1036_v15  ;;  %817 = vmatmul.msk.bf16.gmra.mxu1 %vm257_vm0, %v1031_v14 }
 0x26c   :  { %814 = vmatmul.msk.bf16.gmra.mxu0 %vm257_vm0, %v1098_v40  ;;  %818 = vmatmul.msk.bf16.gmra.mxu1 %vm257_vm0, %v1093_v38 }
 0x27c   :  { %815 = vmatmul.msk.bf16.gmra.mxu0 %vm257_vm0, %v1112_v43  ;;  %819 = vmatmul.msk.bf16.gmra.mxu1 %vm257_vm0, %v1107_v42 }
 0x2c9   :  { %v555_v13 = vpop.f32.mrf.mxu0  ;;  %v584_v15 = vpop.f32.mrf.mxu1 }
 0x2ca   :  { %v585_v21 = vadd.f32 %v584_v15, %v555_v13 }
 0x2cc   :  { %v608_v14 = vadd.f32 %v865_v12, %v585_v21 }
 0x2ce   :  { %616 = vst [vmem:[%s1219_s7] sm:$0xff] %v608_v14 }
 0x2d1   :  { %v557_v40 = vpop.f32.mrf.mxu0  ;;  %v586_v38 = vpop.f32.mrf.mxu1 }
 0x2d2   :  { %v587_v22 = vadd.f32 %v586_v38, %v557_v40 }
 0x2d4   :  { %v609_v23 = vadd.f32 %v865_v12, %v587_v22 }
 0x2d6   :  { %617 = vst [vmem:[%s1219_s7 + $0x8] sm:$0xff] %v609_v23 }
 0x2d9   :  { %v560_v42 = vpop.f32.mrf.mxu0  ;;  %v589_v43 = vpop.f32.mrf.mxu1 }
 0x2da   :  { %v590_v24 = vadd.f32 %v589_v43, %v560_v42 }
 0x2dc   :  { %v610_v25 = vadd.f32 %v865_v12, %v590_v24 }
 0x2de   :  { %618 = vst [vmem:[%s1219_s7 + $0x10] sm:$0xff] %v610_v25 }
 0x2e1   :  { %v562_v26 = vpop.f32.mrf.mxu0  ;;  %v591_v27 = vpop.f32.mrf.mxu1 }
 0x2e2   :  { %v592_v28 = vadd.f32 %v591_v27, %v562_v26 }
 0x2e4   :  { %v611_v29 = vadd.f32 %v865_v12, %v592_v28 }
 0x2e6   :  { %619 = vst [vmem:[%s1219_s7 + $0x18] sm:$0xff] %v611_v29 }
 0x2e9   :  { %v565_v30 = vpop.f32.mrf.mxu0  ;;  %v594_v31 = vpop.f32.mrf.mxu1 }
 0x2ea   :  { %v595_v32 = vadd.f32 %v594_v31, %v565_v30 }
 0x2ec   :  { %v612_v33 = vadd.f32 %v865_v12, %v595_v32 }
 0x2ee   :  { %620 = vst [vmem:[%s1219_s7 + $0x20] sm:$0xff] %v612_v33 }
 0x2f1   :  { %v567_v34 = vpop.f32.mrf.mxu0  ;;  %v596_v35 = vpop.f32.mrf.mxu1 }
 0x2f2   :  { %v597_v36 = vadd.f32 %v596_v35, %v567_v34 }
 0x2f4   :  { %v613_v37 = vadd.f32 %v865_v12, %v597_v36 }
 0x2f6   :  { %621 = vst [vmem:[%s1219_s7 + $0x28] sm:$0xff] %v613_v37 }
 0x2f9   :  { %v570_v39 = vpop.f32.mrf.mxu0  ;;  %v599_v41 = vpop.f32.mrf.mxu1 }
 0x2fa   :  { %v600_v44 = vadd.f32 %v599_v41, %v570_v39 }
 0x2fc   :  { %v614_v45 = vadd.f32 %v865_v12, %v600_v44 }
 0x2fe   :  { %622 = vst [vmem:[%s1219_s7 + $0x30] sm:$0xff] %v614_v45 }
 0x301   :  { %v572_v46 = vpop.f32.mrf.mxu0  ;;  %v601_v47 = vpop.f32.mrf.mxu1 }
 0x302   :  { %v602_v48 = vadd.f32 %v601_v47, %v572_v46 }
 0x304   :  { %v615_v49 = vadd.f32 %v865_v12, %v602_v48 }
 0x306   :  { %623 = vst [vmem:[%s1219_s7 + $0x38] sm:$0xff] %v615_v49 }

</bundles_post_ra>
